<compile_context>
chip_gen: v7x
topology: tpu7x:2x2x1
jax: 0.10.0
libtpu: 0.0.40
codegen_flags: <defaults>
</compile_context>

<pallas_src>
import jax
import jax.numpy as jnp
import numpy as np
from jax.experimental import pallas as pl
from jax.experimental.pallas import tpu as pltpu


def _layer_dropout_kernel(x_ref, drop_ref, o_ref):
    # x_ref/o_ref: (TR, D) VMEM tiles; drop_ref: (1, D) row of {0, drop_val}
    # in x.dtype, broadcast over the TR rows.  Steady state: vld + vadd + vst.
    o_ref[...] = x_ref[...] + drop_ref[...]


def _vmem_budgets():
    """(tile_budget_bytes, vmem_limit_cap_bytes), picked per TPU generation."""
    try:
        vmem_cap = int(pltpu.get_tpu_info().vmem_capacity_bytes)
    except Exception:
        vmem_cap = 128 * 1024 * 1024          # assume v5e/v6e-class if unknown
    if vmem_cap <= 64 * 1024 * 1024:
        # v7x: 64 MiB per TC.  Aggressive tiles, but stay well under the cap.
        return 36 * 1024 * 1024, 48 * 1024 * 1024
    # v5e / v6e: 128 MiB physical VMEM.
    return 24 * 1024 * 1024, 32 * 1024 * 1024


def _round_up8(n):
    return (n + 7) // 8 * 8


def _pick_row_tile(n_rows, d, itemsize, budget_bytes):
    """Largest row tile (multiple of 8, <= 1024) whose double-buffered in+out
    footprint fits the per-generation budget, while guaranteeing >= 2 grid
    steps (so both v7x TensorCores get work) whenever n_rows allows it."""
    if n_rows < 16:
        return n_rows                          # full extent; single step only
    max_rows = max(8, budget_bytes // (4 * d * itemsize))   # 2 bufs x (in+out)
    tr = max(8, min(1024, (max_rows // 8) * 8))
    if tr >= n_rows:
        # Split into (at least) two tiles: on v7x this lets both TCs stream;
        # on v5e/v6e one extra ~0.35 us step is noise.
        tr = max(8, _round_up8(pl.cdiv(n_rows, 2)))
        if tr >= n_rows:
            tr = n_rows
    return tr


def layer_dropout(x, key, p=0.1, inplace=False):
    """x: (N, D) with N == D (PyTorch broadcasting constraint). key: PRNGKey.

    inplace=True aliases the output onto x's buffer (x is donated)."""
    if p < 0 or p > 1:
        raise ValueError(
            "dropout probability has to be between 0 and 1, but got {}".format(p))
    N, D = x.shape
    assert N == D, "PyTorch adds a length-N mask over the last dim; requires N == D"

    # Fast path: p == 0 -> the drop row is identically zero; skip the launch
    # (and the full 2*N*D HBM round trip) entirely.
    if p == 0:
        return x

    # One-time bernoulli drop row in x.dtype.  -1e20 overflows fp16, so clamp
    # to the dtype's finite min when it is not representable.
    finfo = jnp.finfo(x.dtype)
    drop_val = -1e20
    if float(finfo.max) < 1e20:
        drop_val = float(finfo.min)
    drop = jnp.where(
        jax.random.bernoulli(key, p, (1, D)),
        jnp.asarray(drop_val, dtype=x.dtype),
        jnp.asarray(0.0, dtype=x.dtype),
    )

    budget_bytes, limit_cap = _vmem_budgets()
    itemsize = x.dtype.itemsize
    TR = _pick_row_tile(N, D, itemsize, budget_bytes)
    grid = (pl.cdiv(N, TR),)

    # vmem_limit consistent with the actual footprint:
    #   2 double-buffers x (input tile + output tile) + drop row + slack.
    tile_bytes = TR * D * itemsize
    footprint = 4 * tile_bytes + 2 * D * itemsize + 2 * 1024 * 1024
    vmem_limit = int(min(limit_cap, max(footprint, 8 * 1024 * 1024)))

    io_aliases = {0: 0} if inplace else {}

    return pl.pallas_call(
        _layer_dropout_kernel,
        out_shape=jax.ShapeDtypeStruct((N, D), x.dtype),
        grid=grid,
        in_specs=[
            pl.BlockSpec((TR, D), lambda i: (i, 0)),   # row tile, lane-dense
            pl.BlockSpec((1, D), lambda i: (0, 0)),    # same drop row every step
        ],
        out_specs=pl.BlockSpec((TR, D), lambda i: (i, 0)),
        input_output_aliases=io_aliases,
        compiler_params=pltpu.CompilerParams(
            dimension_semantics=("parallel",),         # v7x: shard rows over 2 TCs
            vmem_limit_bytes=vmem_limit,
        ),
    )(x, drop)


if __name__ == "__main__":
    key = jax.random.PRNGKey(0)
    kx, kmask = jax.random.split(key)

    N = D = 128  # small, TPU-aligned, and satisfies the N == D broadcast constraint
    x = jax.random.normal(kx, (N, D), dtype=jnp.float32)

    out = layer_dropout(x, kmask, p=0.1)
    jax.block_until_ready(out)

    # Sanity: every element got either +0 or -1e20 added, constant per column.
    delta = out - x
    ok_values = jnp.all((delta == 0.0) | (delta == jnp.float32(-1e20)))
    col_consistent = jnp.all(delta == delta[0:1, :])
    assert bool(ok_values) and bool(col_consistent), "LayerDropout semantics violated"

    # Fast path sanity: p == 0 is an identity (no kernel launch).
    out0 = layer_dropout(x, kmask, p=0.0)
    assert bool(jnp.all(out0 == x)), "p==0 fast path broke identity"

    print("KERNEL_OK")
</pallas_src>

<mosaic_0001>
module attributes {stable_mosaic.version = 11 : i64} {
  func.func @_layer_dropout_kernel(%arg0: i32, %arg1: memref<64x128xf32, #tpu.memory_space<vmem>>, %arg2: memref<1x128xf32, #tpu.memory_space<vmem>>, %arg3: memref<64x128xf32, #tpu.memory_space<vmem>>) attributes {dimension_semantics = [#tpu.dimension_semantics<parallel>], iteration_bounds = array<i64: 2>, scalar_prefetch = 0 : i64, scratch_operands = 0 : i64, tpu.core_type = #tpu.core_type<tc>, window_params = [{transform_indices = @transform_0, window_bounds = array<i64: 64, 128>}, {pipeline_mode = #tpu.pipeline_mode<synchronous>, transform_indices = @transform_1, window_bounds = array<i64: 1, 128>}, {transform_indices = @transform_2, window_bounds = array<i64: 64, 128>}]} {
    %c0 = arith.constant 0 : index
    %c0_0 = arith.constant 0 : index
    %0 = vector.load %arg1[%c0, %c0_0] : memref<64x128xf32, #tpu.memory_space<vmem>>, vector<64x128xf32>
    %c0_1 = arith.constant 0 : index
    %c0_2 = arith.constant 0 : index
    %1 = vector.load %arg2[%c0_1, %c0_2] : memref<1x128xf32, #tpu.memory_space<vmem>>, vector<1x128xf32>
    %2 = vector.broadcast %1 : vector<1x128xf32> to vector<64x128xf32>
    %3 = arith.addf %0, %2 : vector<64x128xf32>
    %c0_3 = arith.constant 0 : index
    %c0_4 = arith.constant 0 : index
    %4 = vector.load %arg3[%c0_3, %c0_4] : memref<64x128xf32, #tpu.memory_space<vmem>>, vector<64x128xf32>
    tpu.vector_store %arg3[%c0_3, %c0_4], %3 {strides = array<i32>} : memref<64x128xf32, #tpu.memory_space<vmem>>, vector<64x128xf32>,
    return
  }
  func.func @transform_0(%arg0: i32) -> (i32, i32) {
    %c0_i32 = arith.constant 0 : i32
    %c0_i32_0 = arith.constant 0 : i32
    return %arg0, %c0_i32 : i32, i32
  }
  func.func @transform_1(%arg0: i32) -> (i32, i32) {
    %c0_i32 = arith.constant 0 : i32
    %c0_i32_0 = arith.constant 0 : i32
    %c0_i32_1 = arith.constant 0 : i32
    return %c0_i32, %c0_i32_0 : i32, i32
  }
  func.func @transform_2(%arg0: i32) -> (i32, i32) {
    %c0_i32 = arith.constant 0 : i32
    %c0_i32_0 = arith.constant 0 : i32
    return %arg0, %c0_i32 : i32, i32
  }
}

</mosaic_0001>

<bundles_post_ra>
// kernel: tpu_custom_call.1
= control target key start
LH: loop header
LB: loop body
LE: loop exit
PB: predicated region body
PF: predicated region fallthrough
CT: control target
= control target key end

     0   :  { %7 = vsyncpa [#allocation3], 0  ;;  %s633_s0 = inlined_call_operand.hbm [shape: f32[128,128], index: 0, kind: input, shape index: {}]   ;;  %s634_s1 = inlined_call_operand.vmem [shape: f32[1,128], index: 1, kind: input, shape index: {}]   ;;  %s635_s2 = inlined_call_operand.hbm [shape: f32[128,128], index: 2, kind: output, shape index: {}]  }
   0x1   :  { %9 = vsyncpa [#allocation3 + $0x1], 0 }
   0x2   :  { %10 = vsyncpa [#allocation4], 0 }
   0x3   :  { %12 = vsyncpa [#allocation4 + $0x1], 0  ;;  %s468_s9 = smov 0   ;;  %s470_s10 = smov 0  }
   0x4   :  { %s472_s11 = smov 0   ;;  %s474_s12 = smov 0  }
   0x5 LB: > { %s489_s13 = sadd.s32 4294967295, %s445_s12   ;;  %s282_s14 = sadd.s32 4294967294, %s445_s12   ;;  %s445_s12 = sphi %s474_s12, %s648_s12   ;;  %s441_s11 = sphi %s472_s11, %s647_s11   ;;  %s437_s10 = sphi %s470_s10, %s646_s10   ;;  %s433_s9 = sphi %s468_s9, %s645_s9  }
   0x6   : > { %s493_s15 = sadd.s32 1, %s445_s12   ;;  %s25_s16 = sadd.s32 1, %s441_s11 }
   0x7   : > { %s22_s17 = ssub.s32 %s445_s12, %s493_s15  ;;  %p32_p0 = scmp.ne.s32.totalorder %s441_s11, %s437_s10 }
   0x8   : > { %p23_p1 = scmp.eq.s32.totalorder %s22_s17, 0  ;;  %p33_p2 = scmp.eq.s32.totalorder %s445_s12, 0 }
   0x9   : > { %p38_p3 = scmp.ne.s32.totalorder %s437_s10, %s433_s9  ;;  %p39_p4 = scmp.eq.s32.totalorder %s489_s13, 0 }
   0xa   : > { %s505_s18 = scalar_select %p23_p1, %s441_s11, %s25_s16  }
   0xb   : > { %p507_p5 = por %p33_p2, %p32_p0  ;;  %p511_p6 = por %p39_p4, %p38_p3 }
   0xc   : > { %p83_p7 = scmp.eq.s32.totalorder %s489_s13, 1  ;;  %p89_p8 = scmp.eq.s32.totalorder %s282_s14, 1 }
   0xd   : > { %p311_p10 = scmp.lt.s32.totalorder %s445_s12, 2  ;;  %s112_s23 = sand.u32 1, %s441_s11  }
   0xe   : > { %p518_p11 = por %p83_p7, %p32_p0  ;;  %p522_p12 = por %p89_p8, %p38_p3 }
   0xf   : > { %s297_s24 = sshll.u32 %s445_s12, 10  ;;  %s285_s25 = sshll.u32 %s112_s23, 6 }
  0x10   : > { %s639_s21 = scalar_select %p518_p11, 1, 0 }
  0x11   : > { %s640_s22 = scalar_select %p522_p12, 1, 0 }
  0x12   : > { %s531_s28 = scalar_lea.hbm %s633_s0, %s297_s24  ;;  %s116_s29 = scalar_lea.vmem [#allocation2], %s285_s25 }
  0x13   : > { %s123_s30 = sshll.u32 %s116_s29, 4  ;;  %p535_p13 = pnand %p311_p10, %p507_p5  ;;  %s539_s30 = int_to_ptr.vmem [resolvable:$true] %s123_s30 }
  0x14   : > { %s541_s4 = scalar_lea.sflag [#allocation3], %s112_s23  ;;  %s349_s5 = scalar_lea.hbm %s531_s28, 1024 }
  0x15   : > { %p350_p0 = scmp.ne.s32.totalorder %s531_s28, %s349_s5  ;;  %p351_p1 = pneg %p535_p13 }
  0x16   : > { %s354_s8 = scalar_lea.hbm %s633_s0, 2048  ;;  %p355_p4 = scmp.lt.u32.totalorder %s531_s28, %s633_s0 }
  0x17   : > { %p352_p2 = pnand %p351_p1, %p350_p0  ;;  %p356_p5 = scmp.lt.u32.totalorder %s354_s8, %s349_s5 }
  0x18   : > { %p358_p8 = scmp.lt.u32.totalorder %s349_s5, %s531_s28 }
  0x19   : > { %p353_p3 = pneg %p352_p2  ;;  %p357_p7 = por %p356_p5, %p355_p4 }
  0x1b   : > { %p359_p10 = por %p358_p8, %p357_p7 }
  0x1d   : > { %p360_p9 = pnand %p359_p10, %p353_p3 }
  0x1f   : > { %363 = shalt.err (!%p360_p9)
}
  0x20   : > { %s364_s17 = scalar_lea.vmem %s539_s30, 1024  ;;  %s447_s19 = smov [#allocation2]  }
  0x21   : > { %p365_p0 = scmp.ne.s32.totalorder %s539_s30, %s364_s17  ;;  %s369_s23 = sshll.u32 %s447_s19, 4  ;;  %s370_s23 = int_to_ptr.vmem [resolvable:$false] %s369_s23 }
  0x22   : > { %s371_s24 = scalar_lea.vmem %s370_s23, 2048  ;;  %p372_p11 = scmp.lt.s32.totalorder %s539_s30, %s370_s23 }
  0x23   : > { %p367_p2 = pnand %p365_p0, %p351_p1  ;;  %p373_p4 = scmp.lt.s32.totalorder %s371_s24, %s364_s17 }
  0x25   : > { %p368_p12 = pneg %p367_p2  ;;  %p374_p5 = por %p373_p4, %p372_p11 }
  0x27   : > { %p375_p7 = pnand %p374_p5, %p368_p12 }
  0x29   : > { %378 = shalt.err (!%p375_p7)
}
  0x2a   : > { %s448_s25 = smov 128   ;;  %s449_s26 = smov 8  }
  0x2b   : > { %306 = dma.hbm_to_vmem [thread:$0]  (!%p535_p13), %s531_s28, 1024, %s539_s30, %s541_s4, %s448_s25, %s448_s25, %s449_s26  }
  0x2c   : > { %p288_p9 = scmp.ge.s32.totalorder %s445_s12, 1  ;;  %p131_p1 = scmp.lt.s32.totalorder %s445_s12, 3 }
  0x2e   : > { %p132_p3 = pnand %p288_p9, %p131_p1 }
  0x2f   : > { %s572_s27 = sand.u32 (!%p132_p3), 1, %s437_s10  }
  0x30   : > { %135 = sbr.rel (%p132_p3) target bundleno = 83 (0x53), region = 28  ;;  %s289_s29 = sshll.u32 (!%p132_p3), %s572_s27, 6 }
  0x31   : > { %s138_s5 = scalar_lea.sflag (!%p132_p3), [#allocation3], %s572_s27  ;;  %s141_s6 = scalar_lea.vmem (!%p132_p3), [#allocation2], %s289_s29 }
  0x37   : > { %424 = dma.done.wait (%p511_p6), %s138_s5, 1024  }
  0x38   : > { %426 = vsyncadd (%p511_p6), %s138_s5, 4294966272  ;;  %s161_s28 = scalar_lea.vmem [#allocation5], %s289_s29  ;;  %s298_s3 = sshll.u32 %s489_s13, 10  ;;  %v164_v0 = vld [vmem:[%s141_s6] sm:$0xff]  ;;  %v165_v2 = vld [vmem:[%s141_s6 + $0x8] sm:$0xff] }
  0x39   : > { %s209_s30 = sshll.u32 %s161_s28, 4  ;;  %v291_v1 = vld [vmem:[%s634_s1] ss:$0 sm:$0xff]  ;;  %v166_v5 = vld [vmem:[%s141_s6 + $0x10] sm:$0xff]  ;;  %v167_v6 = vld [vmem:[%s141_s6 + $0x18] sm:$0xff]  ;;  %s589_s8 = scalar_lea.hbm %s635_s2, %s298_s3  ;;  %s584_s30 = int_to_ptr.vmem [resolvable:$true] %s209_s30 }
  0x3a   : > { %v179_v3 = vadd.f32 %v291_v1, %v164_v0  ;;  %v180_v4 = vadd.f32 %v291_v1, %v165_v2  ;;  %v168_v7 = vld [vmem:[%s141_s6 + $0x20] sm:$0xff]  ;;  %v181_v8 = vadd.f32 %v291_v1, %v166_v5  ;;  %v182_v9 = vadd.f32 %v291_v1, %v167_v6  ;;  %v169_v11 = vld [vmem:[%s141_s6 + $0x28] sm:$0xff]  ;;  %v170_v12 = vld [vmem:[%s141_s6 + $0x30] sm:$0xff]  ;;  %s196_s14 = scalar_lea.sflag [#allocation4], %s572_s27  ;;  %s379_s16 = scalar_lea.vmem %s584_s30, 1024 }
  0x3b   : > { %v183_v10 = vadd.f32 %v291_v1, %v168_v7  ;;  %v171_v13 = vld [vmem:[%s141_s6 + $0x38] sm:$0xff]  ;;  %v184_v14 = vadd.f32 %v291_v1, %v169_v11  ;;  %v185_v15 = vadd.f32 %v291_v1, %v170_v12  ;;  %p380_p6 = scmp.ne.s32.totalorder %s584_s30, %s379_s16  ;;  %p642_p11 = scmp.ne.s32.totalorder %s639_s21, 0 }
  0x3c   : > { %187 = vst [vmem:[%s161_s28] sm:$0xff] %v179_v3  ;;  %188 = vst [vmem:[%s161_s28 + $0x8] sm:$0xff] %v180_v4  ;;  %v186_v16 = vadd.f32 %v291_v1, %v171_v13  ;;  %s450_s17 = smov [#allocation5]  }
  0x3d   : > { %189 = vst [vmem:[%s161_s28 + $0x10] sm:$0xff] %v181_v8  ;;  %190 = vst [vmem:[%s161_s28 + $0x18] sm:$0xff] %v182_v9  ;;  %p381_p12 = pnand %p380_p6, %p642_p11  ;;  %s383_s19 = sshll.u32 %s450_s17, 4  ;;  %s384_s19 = int_to_ptr.vmem [resolvable:$false] %s383_s19 }
  0x3e   : > { %191 = vst [vmem:[%s161_s28 + $0x20] sm:$0xff] %v183_v10  ;;  %192 = vst [vmem:[%s161_s28 + $0x28] sm:$0xff] %v184_v14  ;;  %s385_s23 = scalar_lea.vmem %s384_s19, 2048  ;;  %p386_p8 = scmp.lt.s32.totalorder %s584_s30, %s384_s19 }
  0x3f   : > { %193 = vst [vmem:[%s161_s28 + $0x30] sm:$0xff] %v185_v15  ;;  %194 = vst [vmem:[%s161_s28 + $0x38] sm:$0xff] %v186_v16  ;;  %p382_p13 = pneg %p381_p12  ;;  %p387_p10 = scmp.lt.s32.totalorder %s385_s23, %s379_s16 }
  0x41   : > { %p388_p0 = por %p387_p10, %p386_p8 }
  0x43   : > { %p389_p2 = pnand %p388_p0, %p382_p13 }
  0x45   : > { %392 = shalt.err (!%p389_p2)
}
  0x46   : > { %s393_s24 = scalar_lea.hbm %s589_s8, 1024  ;;  %s397_s29 = scalar_lea.hbm %s635_s2, 2048 }
  0x47   : > { %p394_p4 = scmp.ne.s32.totalorder %s589_s8, %s393_s24  ;;  %p398_p9 = scmp.lt.u32.totalorder %s589_s8, %s635_s2 }
  0x48   : > { %p399_p1 = scmp.lt.u32.totalorder %s397_s29, %s393_s24  ;;  %p401_p6 = scmp.lt.u32.totalorder %s393_s24, %s589_s8 }
  0x49   : > { %p395_p5 = pnand %p394_p4, %p642_p11 }
  0x4a   : > { %p400_p3 = por %p399_p1, %p398_p9 }
  0x4b   : > { %p396_p7 = pneg %p395_p5 }
  0x4c   : > { %p402_p12 = por %p401_p6, %p400_p3 }
  0x4e   : > { %p403_p13 = pnand %p402_p12, %p396_p7 }
  0x50   : > { %406 = shalt.err (!%p403_p13)
}
  0x51   : > { %s451_s28 = smov 128   ;;  %s452_s3 = smov 8  }
  0x52   : > { %301 = dma.vmem_to_hbm [thread:$0]  (%p642_p11), %s584_s30, 1024, %s589_s8, %s196_s14, %s451_s28, %s451_s28, %s452_s3  }
  0x53 PF: > { %s224_s4 = sand.u32 1, %s433_s9   ;;  %p643_p8 = scmp.ne.s32.totalorder %s640_s22, 0 }
  0x54   : > { %p644_p10 = scmp.ge.s32.totalorder %s445_s12, 2  ;;  %s225_s7 = scalar_lea.sflag [#allocation4], %s224_s4 }
  0x56   : > { %p308_p0 = pnand %p644_p10, %p643_p8 }
  0x58   : > { %428 = dma.done.wait (!%p308_p0), %s225_s7, 1024  }
  0x59   : > { %430 = vsyncadd (!%p308_p0), %s225_s7, 4294966272  ;;  %p15_p2 = scmp.ge.s32.totalorder %s493_s15, 4   ;;  %s645_s9 = smov %s437_s10 }
  0x5a   : > { %s646_s10 = smov %s441_s11  ;;  %s647_s11 = smov %s505_s18 }
  0x5b   : > { %s648_s12 = smov %s493_s15  ;;  %17 = sbr.rel (!%p15_p2) target bundleno = 5 (0x5), region = 73 }
  0x62   :  { %230 = vsyncpa [#allocation3], 1 }
  0x63   :  { %232 = vsyncpa [#allocation3 + $0x1], 1 }
  0x64   :  { %233 = vsyncpa [#allocation4], 1 }
  0x65   :  { %235 = vsyncpa [#allocation4 + $0x1], 1 }

</bundles_post_ra>
